<compile_context>
chip_gen: v7x
topology: tpu7x:2x2x1
jax: 0.10.0
libtpu: 0.0.40
codegen_flags: <defaults>
</compile_context>

<pallas_src>
import functools

import jax
import jax.numpy as jnp
from jax.experimental import pallas as pl
from jax.experimental.pallas import tpu as pltpu

_LANES = 128


def _reciprocal_double_kernel(x_ref, o_ref):
    x = x_ref[...]
    other = x + x                       # tensor + tensor
    o_ref[...] = pl.reciprocal(other)   # torch.reciprocal(other), exact


def _round_up(a: int, b: int) -> int:
    return ((a + b - 1) // b) * b


@functools.partial(jax.jit, static_argnames=("target_block_bytes",))
def simple_reciprocal(x: jax.Array, *, target_block_bytes: int = 1 << 20) -> jax.Array:
    """Computes 1 / (x + x) with a Pallas TPU kernel. Works for any shape."""
    orig_shape = x.shape
    dtype = x.dtype
    n = x.size
    itemsize = jnp.dtype(dtype).itemsize

    # dtype-aware sublane minimum: 8 (f32), 16 (bf16/f16), 32 (int8/fp8).
    sublane = max(8, 32 // itemsize)

    rows_raw = pl.cdiv(n, _LANES)
    rows_aligned = _round_up(rows_raw, sublane)

    # ~1 MiB blocks, rounded to the sublane minimum.
    tr_target = max(
        sublane,
        (target_block_bytes // (_LANES * itemsize)) // sublane * sublane,
    )
    grid_n = max(1, pl.cdiv(rows_aligned, tr_target))
    tr = _round_up(pl.cdiv(rows_aligned, grid_n), sublane)
    rows_padded = tr * grid_n

    xf = jnp.ravel(x)
    n_pad = rows_padded * _LANES - n
    if n_pad:
        # Single pad op; value 1 keeps the (discarded) padded region finite.
        # Note: x == 0 in the real data still yields inf, matching
        # torch.reciprocal semantics.
        xf = jnp.pad(xf, (0, n_pad), constant_values=1)
    x2d = xf.reshape(rows_padded, _LANES)

    out2d = pl.pallas_call(
        _reciprocal_double_kernel,
        out_shape=jax.ShapeDtypeStruct((rows_padded, _LANES), dtype),
        grid_spec=pltpu.PrefetchScalarGridSpec(
            num_scalar_prefetch=0,
            grid=(grid_n,),
            in_specs=[pl.BlockSpec((tr, _LANES), lambda i: (i, 0))],
            out_specs=pl.BlockSpec((tr, _LANES), lambda i: (i, 0)),
        ),
        compiler_params=pltpu.CompilerParams(
            dimension_semantics=("parallel",),
        ),
    )(x2d)

    outf = out2d.reshape(-1)
    if n_pad:
        outf = outf[:n]
    return outf.reshape(orig_shape)


if __name__ == "__main__":
    key = jax.random.PRNGKey(0)
    # NCHW input, matching the PyTorch test conventions.
    x = jax.random.normal(key, (2, 4, 16, 16), dtype=jnp.float32)
    # Keep values away from 0 to avoid inf in the sanity check.
    x = jnp.where(jnp.abs(x) < 1e-2, 1e-2, x)

    out = simple_reciprocal(x)
    out = jax.block_until_ready(out)

    ref = 1.0 / (x + x)
    assert out.shape == x.shape and out.dtype == x.dtype
    assert jnp.allclose(out, ref, rtol=1e-5, atol=1e-6), "mismatch vs reference"
    print("KERNEL_OK")
</pallas_src>

<mosaic_0001>
module attributes {stable_mosaic.version = 11 : i64} {
  func.func @_reciprocal_double_kernel(%arg0: i32, %arg1: memref<16x128xf32, #tpu.memory_space<vmem>>, %arg2: memref<16x128xf32, #tpu.memory_space<vmem>>) attributes {dimension_semantics = [#tpu.dimension_semantics<parallel>], iteration_bounds = array<i64: 1>, scalar_prefetch = 0 : i64, scratch_operands = 0 : i64, tpu.core_type = #tpu.core_type<tc>, window_params = [{transform_indices = @transform_0, window_bounds = array<i64: 16, 128>}, {transform_indices = @transform_1, window_bounds = array<i64: 16, 128>}]} {
    %c0 = arith.constant 0 : index
    %c0_0 = arith.constant 0 : index
    %0 = vector.load %arg1[%c0, %c0_0] : memref<16x128xf32, #tpu.memory_space<vmem>>, vector<16x128xf32>
    %1 = arith.addf %0, %0 : vector<16x128xf32>
    %2 = tpu.reciprocal %1 : vector<16x128xf32> -> vector<16x128xf32>
    %c0_1 = arith.constant 0 : index
    %c0_2 = arith.constant 0 : index
    %3 = vector.load %arg2[%c0_1, %c0_2] : memref<16x128xf32, #tpu.memory_space<vmem>>, vector<16x128xf32>
    tpu.vector_store %arg2[%c0_1, %c0_2], %2 {strides = array<i32>} : memref<16x128xf32, #tpu.memory_space<vmem>>, vector<16x128xf32>,
    return
  }
  func.func @transform_0(%arg0: i32) -> (i32, i32) {
    %c0_i32 = arith.constant 0 : i32
    %c0_i32_0 = arith.constant 0 : i32
    return %arg0, %c0_i32 : i32, i32
  }
  func.func @transform_1(%arg0: i32) -> (i32, i32) {
    %c0_i32 = arith.constant 0 : i32
    %c0_i32_0 = arith.constant 0 : i32
    return %arg0, %c0_i32 : i32, i32
  }
}

</mosaic_0001>

<bundles_post_ra>
// kernel: simple_reciprocal.1
= control target key start
LH: loop header
LB: loop body
LE: loop exit
PB: predicated region body
PF: predicated region fallthrough
CT: control target
= control target key end

     0   :  { %s46_s0 = inlined_call_operand.vmem [shape: f32[16,128], index: 0, kind: input, shape index: {}]   ;;  %s47_s1 = inlined_call_operand.vmem [shape: f32[16,128], index: 1, kind: output, shape index: {}]  }
   0x1   :  { %v8_v0 = vld [vmem:[%s46_s0] sm:$0xff]  ;;  %v9_v1 = vld [vmem:[%s46_s0 + $0x8] sm:$0xff] }
   0x2   :  { %v10_v2 = vadd.f32 %v8_v0, %v8_v0  ;;  %v11_v3 = vadd.f32 %v9_v1, %v9_v1 }
   0x4   :  { %20 = vrcp.f32 %v10_v2 }
   0x5   :  { %22 = vrcp.f32 %v11_v3 }
   0xe   :  { %v21_v4 = vpop.eup %20 }
   0xf   :  { %v23_v5 = vpop.eup %22  ;;  %14 = vst [vmem:[%s47_s1] sm:$0xff] %v21_v4 }
  0x10   :  { %15 = vst [vmem:[%s47_s1 + $0x8] sm:$0xff] %v23_v5 }

</bundles_post_ra>
